<compile_context>
chip_gen: v5e
topology: v5e:2x2
jax: 0.10.0
libtpu: 0.0.40
codegen_flags: <defaults>
</compile_context>

<pallas_src>
import jax
import jax.numpy as jnp
from jax import lax
from jax.experimental import pallas as pl
from jax.experimental.pallas import tpu as pltpu


def _round_up(x, m):
    return ((x + m - 1) // m) * m


def vanilla_rnn_kernel(onehot_ref, table_ref, w_hh_ref, w_lin_ref, b_lin_ref, out_ref):
    TB, _V_pad = onehot_ref.shape           # (T*B_pad, V_pad) one-hot token rows
    B_pad = out_ref.shape[0]                 # 8 (sublane-aligned batch)
    T = TB // B_pad

    # --- Fused embedding lookup + input projection + RNN bias for ALL timesteps ---
    # one_hot(tokens) @ (emb @ W_ih + b_ih + b_hh): a single MXU matmul, hoisted
    # off the serial recurrence.
    proj = jnp.dot(onehot_ref[...], table_ref[...],
                   preferred_element_type=jnp.float32)            # (T*B_pad, H_pad)

    w_hh = w_hh_ref[...]                                          # (H_pad, H_pad)

    # --- Unrolled tanh recurrence: h_t = tanh(proj_t + h_{t-1} @ W_hh) ---
    # h0 == 0 -> first step needs no matmul; every slice is (8, H_pad) tile-aligned.
    h = jnp.tanh(proj[0:B_pad, :])
    acc = h
    for t in range(1, T):                                         # T is static: full unroll
        p_t = proj[t * B_pad:(t + 1) * B_pad, :]                  # aligned static slice
        h = jnp.tanh(p_t + jnp.dot(h, w_hh, preferred_element_type=jnp.float32))
        acc = acc + h

    # --- mean over time -> linear head (VPU mul + lane reduce) -> sigmoid ---
    mean_h = acc * (1.0 / T)                                      # scores.mean(dim=1)
    logit = jnp.sum(mean_h * w_lin_ref[...], axis=-1, keepdims=True) + b_lin_ref[0]
    out_ref[...] = jnp.broadcast_to(jax.nn.sigmoid(logit), out_ref.shape)  # lane-dense store


def prepare_params(params):
    """One-time weight folding + padding (NOT on the per-call path)."""
    V, _E = params["embedding"].shape
    H = params["w_hh"].shape[0]
    V_pad = _round_up(V, 128)
    H_pad = _round_up(H, 128)

    # Fold embedding + input projection + both RNN biases into one (V_pad, H_pad) table.
    b = params["b_ih"] + params["b_hh"]
    core = params["embedding"] @ params["w_ih"] + b[None, :]                      # (V, H)
    table = jnp.zeros((V_pad, H_pad), jnp.float32).at[:V, :H].set(core)

    w_hh = jnp.zeros((H_pad, H_pad), jnp.float32).at[:H, :H].set(params["w_hh"])
    w_lin_row = jnp.zeros((1, H_pad), jnp.float32).at[0, :H].set(params["w_lin"][:, 0])
    b_lin = params["b_lin"].reshape(1).astype(jnp.float32)

    return {"table": table, "w_hh": w_hh, "w_lin_row": w_lin_row, "b_lin": b_lin}


@jax.jit
def vanilla_rnn_forward(x_tokens, prep):
    B, T = x_tokens.shape
    B_pad = _round_up(B, 8)                   # sublane-aligned batch
    V_pad, H_pad = prep["table"].shape

    # Time-major tokens, batch padded to 8 rows (padded rows use token id 0), shipped
    # as a lane-dense f32 one-hot slab (T*B_pad, V_pad).
    tok = jnp.zeros((T, B_pad), jnp.int32).at[:, :B].set(
        jnp.transpose(x_tokens).astype(jnp.int32))
    tok = tok.reshape(T * B_pad)
    onehot = (tok[:, None] == jnp.arange(V_pad, dtype=jnp.int32)[None, :]).astype(jnp.float32)

    out = pl.pallas_call(
        vanilla_rnn_kernel,
        out_shape=jax.ShapeDtypeStruct((B_pad, 128), jnp.float32),
        grid=(1,),
        in_specs=[
            pl.BlockSpec((T * B_pad, V_pad), lambda i: (0, 0)),     # one-hot token rows
            pl.BlockSpec((V_pad, H_pad), lambda i: (0, 0)),         # fused emb/W_ih/bias table
            pl.BlockSpec((H_pad, H_pad), lambda i: (0, 0)),         # W_hh (padded)
            pl.BlockSpec((1, H_pad), lambda i: (0, 0)),             # W_lin as a lane row
            pl.BlockSpec(memory_space=pltpu.MemorySpace.SMEM),      # b_lin scalar
        ],
        out_specs=pl.BlockSpec((B_pad, 128), lambda i: (0, 0)),
        compiler_params=pltpu.CompilerParams(dimension_semantics=("arbitrary",)),
    )(onehot, prep["table"], prep["w_hh"], prep["w_lin_row"], prep["b_lin"])

    return out[:B, :1]                                              # (B, 1)


def reference_forward(x_tokens, params):
    """Pure-JAX reference matching the PyTorch module semantics."""
    embed = jnp.take(params["embedding"], x_tokens, axis=0)        # (B, T, E)
    B, T, _E = embed.shape
    H = params["w_hh"].shape[0]
    b = params["b_ih"] + params["b_hh"]

    def step(h, x_t):
        h_new = jnp.tanh(x_t @ params["w_ih"] + h @ params["w_hh"] + b)
        return h_new, h_new

    h0 = jnp.zeros((B, H), jnp.float32)
    _, hs = lax.scan(step, h0, jnp.transpose(embed, (1, 0, 2)))    # (T, B, H)
    mean_h = hs.mean(axis=0)
    return jax.nn.sigmoid(mean_h @ params["w_lin"] + params["b_lin"])


if __name__ == "__main__":
    # Small shapes consistent with the module: vocab=32, embed_dim=16,
    # hidden_size=32, batch=4, seq=8, linear_hidden_size=1.
    V, E, H, B, T = 32, 16, 32, 4, 8
    key = jax.random.PRNGKey(0)
    keys = jax.random.split(key, 8)

    emb = jax.random.normal(keys[0], (V, E), jnp.float32) * 0.1
    emb = emb.at[0].set(0.0)  # padding_idx=0 -> zero row

    s = 1.0 / jnp.sqrt(jnp.float32(H))
    params = {
        "embedding": emb,
        "w_ih": jax.random.uniform(keys[1], (E, H), jnp.float32, -s, s),
        "w_hh": jax.random.uniform(keys[2], (H, H), jnp.float32, -s, s),
        "b_ih": jax.random.uniform(keys[3], (H,), jnp.float32, -s, s),
        "b_hh": jax.random.uniform(keys[4], (H,), jnp.float32, -s, s),
        "w_lin": jax.random.uniform(keys[5], (H, 1), jnp.float32, -s, s),
        "b_lin": jax.random.uniform(keys[6], (1,), jnp.float32, -s, s),
    }
    x = jax.random.randint(keys[7], (B, T), 0, V)  # token ids

    prep = jax.tree_util.tree_map(jax.block_until_ready, prepare_params(params))  # one-time
    out = jax.block_until_ready(vanilla_rnn_forward(x, prep))
    ref = reference_forward(x, params)

    assert out.shape == (B, 1), out.shape
    assert jnp.allclose(out, ref, atol=1e-5, rtol=1e-5), (out, ref)
    print("KERNEL_OK")
</pallas_src>

<mosaic_0001>
module attributes {stable_mosaic.version = 11 : i64} {
  func.func @vanilla_rnn_kernel(%arg0: i32, %arg1: memref<64x128xf32, #tpu.memory_space<vmem>>, %arg2: memref<128x128xf32, #tpu.memory_space<vmem>>, %arg3: memref<128x128xf32, #tpu.memory_space<vmem>>, %arg4: memref<1x128xf32, #tpu.memory_space<vmem>>, %arg5: memref<1xf32, #tpu.memory_space<smem>>, %arg6: memref<8x128xf32, #tpu.memory_space<vmem>>) attributes {dimension_semantics = [#tpu.dimension_semantics<arbitrary>], iteration_bounds = array<i64: 1>, scalar_prefetch = 0 : i64, scratch_operands = 0 : i64, tpu.core_type = #tpu.core_type<tc>, window_params = [{pipeline_mode = #tpu.pipeline_mode<synchronous>, transform_indices = @transform_0, window_bounds = array<i64: 64, 128>}, {pipeline_mode = #tpu.pipeline_mode<synchronous>, transform_indices = @transform_1, window_bounds = array<i64: 128, 128>}, {pipeline_mode = #tpu.pipeline_mode<synchronous>, transform_indices = @transform_2, window_bounds = array<i64: 128, 128>}, {pipeline_mode = #tpu.pipeline_mode<synchronous>, transform_indices = @transform_3, window_bounds = array<i64: 1, 128>}, {transform_indices = @transform_4, window_bounds = array<i64: 1>}, {pipeline_mode = #tpu.pipeline_mode<synchronous>, transform_indices = @transform_5, window_bounds = array<i64: 8, 128>}]} {
    %c0 = arith.constant 0 : index
    %c0_0 = arith.constant 0 : index
    %0 = vector.load %arg1[%c0, %c0_0] : memref<64x128xf32, #tpu.memory_space<vmem>>, vector<64x128xf32>
    %c0_1 = arith.constant 0 : index
    %c0_2 = arith.constant 0 : index
    %1 = vector.load %arg2[%c0_1, %c0_2] : memref<128x128xf32, #tpu.memory_space<vmem>>, vector<128x128xf32>
    %cst = arith.constant dense<0.000000e+00> : vector<64x128xf32>
    %2 = tpu.matmul %0, %1, %cst {dimension_numbers = #tpu.dot_dimension_numbers<[1], [0], [0], [1], [0, 0, 1, 1], [], []>} : vector<64x128xf32>, vector<128x128xf32>, vector<64x128xf32> -> vector<64x128xf32>
    %c0_3 = arith.constant 0 : index
    %c0_4 = arith.constant 0 : index
    %3 = vector.load %arg3[%c0_3, %c0_4] : memref<128x128xf32, #tpu.memory_space<vmem>>, vector<128x128xf32>
    %4 = vector.extract_strided_slice %2 {offsets = [0, 0], sizes = [8, 128], strides = [1, 1]} : vector<64x128xf32> to vector<8x128xf32>
    %5 = math.tanh %4 : vector<8x128xf32>
    %6 = vector.extract_strided_slice %2 {offsets = [8, 0], sizes = [8, 128], strides = [1, 1]} : vector<64x128xf32> to vector<8x128xf32>
    %cst_5 = arith.constant dense<0.000000e+00> : vector<8x128xf32>
    %7 = tpu.matmul %5, %3, %cst_5 {dimension_numbers = #tpu.dot_dimension_numbers<[1], [0], [0], [1], [0, 0, 1, 1], [], []>} : vector<8x128xf32>, vector<128x128xf32>, vector<8x128xf32> -> vector<8x128xf32>
    %8 = arith.addf %6, %7 : vector<8x128xf32>
    %9 = math.tanh %8 : vector<8x128xf32>
    %10 = arith.addf %5, %9 : vector<8x128xf32>
    %11 = vector.extract_strided_slice %2 {offsets = [16, 0], sizes = [8, 128], strides = [1, 1]} : vector<64x128xf32> to vector<8x128xf32>
    %cst_6 = arith.constant dense<0.000000e+00> : vector<8x128xf32>
    %12 = tpu.matmul %9, %3, %cst_6 {dimension_numbers = #tpu.dot_dimension_numbers<[1], [0], [0], [1], [0, 0, 1, 1], [], []>} : vector<8x128xf32>, vector<128x128xf32>, vector<8x128xf32> -> vector<8x128xf32>
    %13 = arith.addf %11, %12 : vector<8x128xf32>
    %14 = math.tanh %13 : vector<8x128xf32>
    %15 = arith.addf %10, %14 : vector<8x128xf32>
    %16 = vector.extract_strided_slice %2 {offsets = [24, 0], sizes = [8, 128], strides = [1, 1]} : vector<64x128xf32> to vector<8x128xf32>
    %cst_7 = arith.constant dense<0.000000e+00> : vector<8x128xf32>
    %17 = tpu.matmul %14, %3, %cst_7 {dimension_numbers = #tpu.dot_dimension_numbers<[1], [0], [0], [1], [0, 0, 1, 1], [], []>} : vector<8x128xf32>, vector<128x128xf32>, vector<8x128xf32> -> vector<8x128xf32>
    %18 = arith.addf %16, %17 : vector<8x128xf32>
    %19 = math.tanh %18 : vector<8x128xf32>
    %20 = arith.addf %15, %19 : vector<8x128xf32>
    %21 = vector.extract_strided_slice %2 {offsets = [32, 0], sizes = [8, 128], strides = [1, 1]} : vector<64x128xf32> to vector<8x128xf32>
    %cst_8 = arith.constant dense<0.000000e+00> : vector<8x128xf32>
    %22 = tpu.matmul %19, %3, %cst_8 {dimension_numbers = #tpu.dot_dimension_numbers<[1], [0], [0], [1], [0, 0, 1, 1], [], []>} : vector<8x128xf32>, vector<128x128xf32>, vector<8x128xf32> -> vector<8x128xf32>
    %23 = arith.addf %21, %22 : vector<8x128xf32>
    %24 = math.tanh %23 : vector<8x128xf32>
    %25 = arith.addf %20, %24 : vector<8x128xf32>
    %26 = vector.extract_strided_slice %2 {offsets = [40, 0], sizes = [8, 128], strides = [1, 1]} : vector<64x128xf32> to vector<8x128xf32>
    %cst_9 = arith.constant dense<0.000000e+00> : vector<8x128xf32>
    %27 = tpu.matmul %24, %3, %cst_9 {dimension_numbers = #tpu.dot_dimension_numbers<[1], [0], [0], [1], [0, 0, 1, 1], [], []>} : vector<8x128xf32>, vector<128x128xf32>, vector<8x128xf32> -> vector<8x128xf32>
    %28 = arith.addf %26, %27 : vector<8x128xf32>
    %29 = math.tanh %28 : vector<8x128xf32>
    %30 = arith.addf %25, %29 : vector<8x128xf32>
    %31 = vector.extract_strided_slice %2 {offsets = [48, 0], sizes = [8, 128], strides = [1, 1]} : vector<64x128xf32> to vector<8x128xf32>
    %cst_10 = arith.constant dense<0.000000e+00> : vector<8x128xf32>
    %32 = tpu.matmul %29, %3, %cst_10 {dimension_numbers = #tpu.dot_dimension_numbers<[1], [0], [0], [1], [0, 0, 1, 1], [], []>} : vector<8x128xf32>, vector<128x128xf32>, vector<8x128xf32> -> vector<8x128xf32>
    %33 = arith.addf %31, %32 : vector<8x128xf32>
    %34 = math.tanh %33 : vector<8x128xf32>
    %35 = arith.addf %30, %34 : vector<8x128xf32>
    %36 = vector.extract_strided_slice %2 {offsets = [56, 0], sizes = [8, 128], strides = [1, 1]} : vector<64x128xf32> to vector<8x128xf32>
    %cst_11 = arith.constant dense<0.000000e+00> : vector<8x128xf32>
    %37 = tpu.matmul %34, %3, %cst_11 {dimension_numbers = #tpu.dot_dimension_numbers<[1], [0], [0], [1], [0, 0, 1, 1], [], []>} : vector<8x128xf32>, vector<128x128xf32>, vector<8x128xf32> -> vector<8x128xf32>
    %38 = arith.addf %36, %37 : vector<8x128xf32>
    %39 = math.tanh %38 : vector<8x128xf32>
    %40 = arith.addf %35, %39 : vector<8x128xf32>
    %cst_12 = arith.constant 1.250000e-01 : f32
    %41 = vector.broadcast %cst_12 : f32 to vector<8x128xf32>
    %42 = arith.mulf %40, %41 : vector<8x128xf32>
    %c0_13 = arith.constant 0 : index
    %c0_14 = arith.constant 0 : index
    %43 = vector.load %arg4[%c0_13, %c0_14] : memref<1x128xf32, #tpu.memory_space<vmem>>, vector<1x128xf32>
    %44 = vector.broadcast %43 : vector<1x128xf32> to vector<8x128xf32>
    %45 = arith.mulf %42, %44 : vector<8x128xf32>
    %cst_15 = arith.constant dense<0.000000e+00> : vector<8xf32>
    %46 = vector.multi_reduction <add>, %45, %cst_15 [1] : vector<8x128xf32> to vector<8xf32>
    %47 = vector.shape_cast %46 : vector<8xf32> to vector<8x1xf32>
    %c0_16 = arith.constant 0 : index
    %48 = memref.load %arg5[%c0_16] : memref<1xf32, #tpu.memory_space<smem>>
    %49 = vector.broadcast %48 : f32 to vector<8x1xf32>
    %50 = arith.addf %47, %49 : vector<8x1xf32>
    %51 = arith.negf %50 : vector<8x1xf32>
    %52 = math.exp %51 : vector<8x1xf32>
    %cst_17 = arith.constant 1.000000e+00 : f32
    %53 = vector.broadcast %cst_17 : f32 to vector<8x1xf32>
    %54 = arith.addf %53, %52 : vector<8x1xf32>
    %55 = arith.divf %53, %54 : vector<8x1xf32>
    %56 = vector.shape_cast %55 : vector<8x1xf32> to vector<8x1xf32>
    %57 = vector.broadcast %56 : vector<8x1xf32> to vector<8x128xf32>
    %c0_18 = arith.constant 0 : index
    %c0_19 = arith.constant 0 : index
    %58 = vector.load %arg6[%c0_18, %c0_19] : memref<8x128xf32, #tpu.memory_space<vmem>>, vector<8x128xf32>
    tpu.vector_store %arg6[%c0_18, %c0_19], %57 {strides = array<i32>} : memref<8x128xf32, #tpu.memory_space<vmem>>, vector<8x128xf32>,
    return
  }
  func.func @transform_0(%arg0: i32) -> (i32, i32) {
    %c0_i32 = arith.constant 0 : i32
    %c0_i32_0 = arith.constant 0 : i32
    %c0_i32_1 = arith.constant 0 : i32
    return %c0_i32, %c0_i32_0 : i32, i32
  }
  func.func @transform_1(%arg0: i32) -> (i32, i32) {
    %c0_i32 = arith.constant 0 : i32
    %c0_i32_0 = arith.constant 0 : i32
    %c0_i32_1 = arith.constant 0 : i32
    return %c0_i32, %c0_i32_0 : i32, i32
  }
  func.func @transform_2(%arg0: i32) -> (i32, i32) {
    %c0_i32 = arith.constant 0 : i32
    %c0_i32_0 = arith.constant 0 : i32
    %c0_i32_1 = arith.constant 0 : i32
    return %c0_i32, %c0_i32_0 : i32, i32
  }
  func.func @transform_3(%arg0: i32) -> (i32, i32) {
    %c0_i32 = arith.constant 0 : i32
    %c0_i32_0 = arith.constant 0 : i32
    %c0_i32_1 = arith.constant 0 : i32
    return %c0_i32, %c0_i32_0 : i32, i32
  }
  func.func @transform_4(%arg0: i32) -> i32 {
    %c0_i32 = arith.constant 0 : i32
    %c0_i32_0 = arith.constant 0 : i32
    return %c0_i32 : i32
  }
  func.func @transform_5(%arg0: i32) -> (i32, i32) {
    %c0_i32 = arith.constant 0 : i32
    %c0_i32_0 = arith.constant 0 : i32
    %c0_i32_1 = arith.constant 0 : i32
    return %c0_i32, %c0_i32_0 : i32, i32
  }
}

</mosaic_0001>

<bundles_post_ra>
// kernel: eq.8
= control target key start
LH: loop header
LB: loop body
LE: loop exit
PB: predicated region body
PF: predicated region fallthrough
CT: control target
= control target key end

     0   :  { %s67_s10 = smov 56   ;;  %s68_s11 = smov 40   ;;  %vm3_vm0 = vcmask 64512   ;;  %vm9_vm1 = vcmask 523712   ;;  %vm15_vm2 = vcmask 458112   ;;  %vm21_vm3 = vcmask 392512   ;;  %s111_s0 = inlined_call_operand.vmem [shape: s32[8,8], index: 0, kind: input, shape index: {}]   ;;  %s112_s1 = inlined_call_operand.vmem [shape: s32[64], index: 1, kind: output, shape index: {}]  }
   0x1   :  { %v53_v0 = vld [vmem:[%s111_s0 + $0x7] sm:$0x1]   ;;  %v55_v1 = vld [vmem:[%s111_s0 + $0x5] sm:$0x1]   ;;  %v57_v2 = vld [vmem:[%s111_s0 + $0x3] sm:$0x1]  }
   0x2   :  { %7 = vrot.lane.b32.xlu0 %v53_v0, %s67_s10  ;;  %19 = vrot.lane.b32.xlu1 %v55_v1, %s68_s11  ;;  %s69_s14 = smov 24   ;;  %v54_v3 = vld [vmem:[%s111_s0 + $0x6] sm:$0x1]   ;;  %v56_v4 = vld [vmem:[%s111_s0 + $0x4] sm:$0x1]   ;;  %s70_s21 = smov 48  }
   0x3   :  { %31 = vrot.lane.b32.xlu2 %v57_v2, %s69_s14  ;;  %v58_v5 = vld [vmem:[%s111_s0 + $0x2] sm:$0x1]   ;;  %s71_s22 = smov 32   ;;  %s72_s23 = smov 16   ;;  %v59_v6 = vld [vmem:[%s111_s0 + $0x1] sm:$0x1]  }
   0x4   :  { %s73_s26 = smov 8   ;;  %v2_v7 = vld [vmem:[%s111_s0] sm:$0x1]   ;;  %vm27_vm4 = vcmask 326912   ;;  %vm33_vm5 = vcmask 261312   ;;  %vm39_vm6 = vcmask 195712  }
   0x5   :  { %4 = vst.msk [vmem:[#allocation0] sm:$0x1] %vm3_vm0, %v2_v7   ;;  %vm45_vm7 = vcmask 130112  }
   0xa   :  { %13 = vrot.lane.b32.xlu0 %v54_v3, %s70_s21  ;;  %25 = vrot.lane.b32.xlu1 %v56_v4, %s71_s22 }
   0xb   :  { %37 = vrot.lane.b32.xlu2 %v58_v5, %s72_s23 }
  0x12   :  { %43 = vrot.lane.b32.xlu0 %v59_v6, %s73_s26 }
  0x5d   :  { %v32_v8 = vpop.permute.xlu2 %31  }
  0x65   :  { %v38_v9 = vpop.permute.xlu2 %37  }
  0x74   :  { %v8_v10 = vpop.permute.xlu0 %7   ;;  %v20_v11 = vpop.permute.xlu1 %19  }
  0x75   :  { %10 = vst.msk [vmem:[#allocation0] sm:$0x1] %vm9_vm1, %v8_v10  }
  0x7c   :  { %v14_v12 = vpop.permute.xlu0 %13   ;;  %v26_v13 = vpop.permute.xlu1 %25  }
  0x7d   :  { %16 = vst.msk [vmem:[#allocation0] sm:$0x1] %vm15_vm2, %v14_v12  }
  0x7e   :  { %22 = vst.msk [vmem:[#allocation0] sm:$0x1] %vm21_vm3, %v20_v11  }
  0x7f   :  { %28 = vst.msk [vmem:[#allocation0] sm:$0x1] %vm27_vm4, %v26_v13  }
  0x80   :  { %34 = vst.msk [vmem:[#allocation0] sm:$0x1] %vm33_vm5, %v32_v8  }
  0x81   :  { %40 = vst.msk [vmem:[#allocation0] sm:$0x1] %vm39_vm6, %v38_v9  }
  0x84   :  { %v44_v14 = vpop.permute.xlu0 %43  }
  0x85   :  { %46 = vst.msk [vmem:[#allocation0] sm:$0x1] %vm45_vm7, %v44_v14  }
  0x8c   :  { %v49_v15 = vld [vmem:[#allocation0] sm:$0x1] }
  0x8d   :  { %52 = vst [vmem:[%s112_s1] sm:$0x1] %v49_v15 }

// kernel: vanilla_rnn_forward.1
= control target key start
LH: loop header
LB: loop body
LE: loop exit
PB: predicated region body
PF: predicated region fallthrough
CT: control target
= control target key end

     0   :  { %11 = vsyncpa [#allocation4], 0  ;;  %s601_s0 = inlined_call_operand.vmem [shape: f32[64,128], index: 0, kind: input, shape index: {}]   ;;  %s602_s1 = inlined_call_operand.hbm [shape: f32[128,128], index: 1, kind: input, shape index: {}]   ;;  %s603_s2 = inlined_call_operand.hbm [shape: f32[128,128], index: 2, kind: input, shape index: {}]   ;;  %s604_s3 = inlined_call_operand.vmem [shape: f32[1,128], index: 3, kind: input, shape index: {}]   ;;  %s605_s4 = inlined_call_operand.<no memory space> [shape: f32[1], index: 4, kind: input, shape index: {}]   ;;  %s606_s5 = inlined_call_operand.vmem [shape: f32[8,128], index: 5, kind: output, shape index: {}]  }
   0x1   :  { %s19_s20 = sshll.u32 %s602_s1, 4  ;;  %s20_s20 = int_to_ptr.hbm [resolvable:$true] %s19_s20 }
   0x2   :  { %12 = vsyncpa [#allocation6], 0  ;;  %s411_s21 = smov [#allocation3]   ;;  %s32_s25 = sshll.u32 %s603_s2, 4  ;;  %s33_s25 = int_to_ptr.hbm [resolvable:$true] %s32_s25 }
   0x3   :  { %s21_s22 = sshll.u32 %s411_s21, 4  ;;  %s412_s26 = smov 128   ;;  %s22_s22 = int_to_ptr.vmem [resolvable:$true] %s21_s22 }
   0x4   :  { %s413_s27 = smov 8   ;;  %s414_s28 = smov [#allocation5]  }
   0x5   :  { %27 = dma.hbm_to_vmem [thread:$0]  %s20_s20, 2048, %s22_s22, [#allocation4], %s412_s26, %s412_s26, %s413_s27  }
   0x6   :  { %s34_s29 = sshll.u32 %s414_s28, 4  ;;  %s35_s29 = int_to_ptr.vmem [resolvable:$true] %s34_s29 }
   0x7   :  { %40 = dma.hbm_to_vmem [thread:$0]  %s33_s25, 2048, %s35_s29, [#allocation6], %s412_s26, %s412_s26, %s413_s27  }
   0x8   :  { %407 = dma.done.wait [#allocation4], 2048  }
   0x9   :  { %408 = vsyncadd [#allocation4], 4294965248 }
   0xa   :  { %409 = dma.done.wait [#allocation6], 2048  }
   0xb   :  { %410 = vsyncadd [#allocation6], 4294965248  ;;  %v76_v0 = vld [vmem:[#allocation3 + $0x78] sm:$0xff]  ;;  %v75_v1 = vld [vmem:[#allocation3 + $0x70] sm:$0xff] }
   0xc   :  { %77 = vmatpush.msra.mxu0 %v76_v0  ;;  %v74_v2 = vld [vmem:[#allocation3 + $0x68] sm:$0xff]  ;;  %v73_v3 = vld [vmem:[#allocation3 + $0x60] sm:$0xff]  ;;  %v451_v4 = vld [vmem:[#allocation5 + $0x78] sm:$0xff] }
   0xd   :  { %v72_v5 = vld [vmem:[#allocation3 + $0x58] sm:$0xff]  ;;  %135 = vmatpush.msra.mxu1 %v451_v4  ;;  %v454_v6 = vld [vmem:[#allocation5 + $0x70] sm:$0xff]  ;;  %158 = vmatpush.msra.mxu2 %v451_v4  ;;  %v457_v7 = vld [vmem:[#allocation5 + $0x68] sm:$0xff] }
   0xe   :  { %78 = vmatpush.msra.mxu0 %v75_v1  ;;  %181 = vmatpush.msra.mxu3 %v451_v4  ;;  %v71_v8 = vld [vmem:[#allocation3 + $0x50] sm:$0xff]  ;;  %v462_v9 = vld [vmem:[#allocation5 + $0x60] sm:$0xff]  ;;  %v70_v10 = vld [vmem:[#allocation3 + $0x48] sm:$0xff] }
   0xf   :  { %136 = vmatpush.msra.mxu1 %v454_v6  ;;  %159 = vmatpush.msra.mxu2 %v454_v6  ;;  %v467_v11 = vld [vmem:[#allocation5 + $0x58] sm:$0xff]  ;;  %v69_v12 = vld [vmem:[#allocation3 + $0x40] sm:$0xff]  ;;  %v472_v13 = vld [vmem:[#allocation5 + $0x50] sm:$0xff] }
  0x10   :  { %79 = vmatpush.msra.mxu0 %v74_v2  ;;  %182 = vmatpush.msra.mxu3 %v454_v6  ;;  %v68_v14 = vld [vmem:[#allocation3 + $0x38] sm:$0xff]  ;;  %v477_v15 = vld [vmem:[#allocation5 + $0x48] sm:$0xff]  ;;  %v67_v16 = vld [vmem:[#allocation3 + $0x30] sm:$0xff] }
  0x11   :  { %137 = vmatpush.msra.mxu1 %v457_v7  ;;  %160 = vmatpush.msra.mxu2 %v457_v7  ;;  %v482_v17 = vld [vmem:[#allocation5 + $0x40] sm:$0xff]  ;;  %v66_v18 = vld [vmem:[#allocation3 + $0x28] sm:$0xff]  ;;  %v487_v19 = vld [vmem:[#allocation5 + $0x38] sm:$0xff] }
  0x12   :  { %80 = vmatpush.msra.mxu0 %v73_v3  ;;  %183 = vmatpush.msra.mxu3 %v457_v7  ;;  %v65_v20 = vld [vmem:[#allocation3 + $0x20] sm:$0xff]  ;;  %v492_v21 = vld [vmem:[#allocation5 + $0x30] sm:$0xff]  ;;  %v64_v22 = vld [vmem:[#allocation3 + $0x18] sm:$0xff] }
  0x13   :  { %138 = vmatpush.msra.mxu1 %v462_v9  ;;  %161 = vmatpush.msra.mxu2 %v462_v9  ;;  %v497_v23 = vld [vmem:[#allocation5 + $0x28] sm:$0xff]  ;;  %v63_v24 = vld [vmem:[#allocation3 + $0x10] sm:$0xff]  ;;  %v502_v25 = vld [vmem:[#allocation5 + $0x20] sm:$0xff] }
  0x14   :  { %81 = vmatpush.msra.mxu0 %v72_v5  ;;  %184 = vmatpush.msra.mxu3 %v462_v9  ;;  %v62_v26 = vld [vmem:[#allocation3 + $0x8] sm:$0xff]  ;;  %v61_v27 = vld [vmem:[#allocation3] sm:$0xff]  ;;  %v121_v29 = vld [vmem:[#allocation5 + $0x18] sm:$0xff] }
  0x15   :  { %139 = vmatpush.msra.mxu1 %v467_v11  ;;  %162 = vmatpush.msra.mxu2 %v467_v11  ;;  %v53_v28 = vld [vmem:[%s601_s0] sm:$0xff]  ;;  %v120_v30 = vld [vmem:[#allocation5 + $0x10] sm:$0xff]  ;;  %v526_v31 = vld [vmem:[#allocation5 + $0x8] sm:$0xff] }
  0x16   :  { %82 = vmatpush.msra.mxu0 %v71_v8  ;;  %185 = vmatpush.msra.mxu3 %v467_v11  ;;  %v54_v32 = vld [vmem:[%s601_s0 + $0x8] sm:$0xff]  ;;  %v118_v33 = vld [vmem:[#allocation5] sm:$0xff]  ;;  %v55_v36 = vld [vmem:[%s601_s0 + $0x10] sm:$0xff] }
  0x17   :  { %140 = vmatpush.msra.mxu1 %v472_v13  ;;  %163 = vmatpush.msra.mxu2 %v472_v13  ;;  %v56_v41 = vld [vmem:[%s601_s0 + $0x18] sm:$0xff]  ;;  %v57_v48 = vld [vmem:[%s601_s0 + $0x20] sm:$0xff]  ;;  %v58_v54 = vld [vmem:[%s601_s0 + $0x28] sm:$0xff] }
  0x18   :  { %83 = vmatpush.msra.mxu0 %v70_v10  ;;  %186 = vmatpush.msra.mxu3 %v472_v13  ;;  %v59_v60 = vld [vmem:[%s601_s0 + $0x30] sm:$0xff]  ;;  %v60_v2 = vld [vmem:[%s601_s0 + $0x38] sm:$0xff] }
  0x19   :  { %141 = vmatpush.msra.mxu1 %v477_v15  ;;  %164 = vmatpush.msra.mxu2 %v477_v15 }
  0x1a   :  { %84 = vmatpush.msra.mxu0 %v69_v12  ;;  %187 = vmatpush.msra.mxu3 %v477_v15 }
  0x1b   :  { %142 = vmatpush.msra.mxu1 %v482_v17  ;;  %165 = vmatpush.msra.mxu2 %v482_v17 }
  0x1c   :  { %85 = vmatpush.msra.mxu0 %v68_v14  ;;  %188 = vmatpush.msra.mxu3 %v482_v17 }
  0x1d   :  { %143 = vmatpush.msra.mxu1 %v487_v19  ;;  %166 = vmatpush.msra.mxu2 %v487_v19 }
  0x1e   :  { %86 = vmatpush.msra.mxu0 %v67_v16  ;;  %189 = vmatpush.msra.mxu3 %v487_v19  ;;  %v305_v16 = vstv %s605_s4 }
  0x1f   :  { %144 = vmatpush.msra.mxu1 %v492_v21  ;;  %167 = vmatpush.msra.mxu2 %v492_v21 }
  0x20   :  { %87 = vmatpush.msra.mxu0 %v66_v18  ;;  %190 = vmatpush.msra.mxu3 %v492_v21 }
  0x21   :  { %145 = vmatpush.msra.mxu1 %v497_v23  ;;  %168 = vmatpush.msra.mxu2 %v497_v23 }
  0x22   :  { %88 = vmatpush.msra.mxu0 %v65_v20  ;;  %191 = vmatpush.msra.mxu3 %v497_v23 }
  0x23   :  { %146 = vmatpush.msra.mxu1 %v502_v25  ;;  %169 = vmatpush.msra.mxu2 %v502_v25 }
  0x24   :  { %89 = vmatpush.msra.mxu0 %v64_v22  ;;  %192 = vmatpush.msra.mxu3 %v502_v25 }
  0x25   :  { %147 = vmatpush.msra.mxu1 %v121_v29  ;;  %170 = vmatpush.msra.mxu2 %v121_v29 }
  0x26   :  { %90 = vmatpush.msra.mxu0 %v63_v24  ;;  %193 = vmatpush.msra.mxu3 %v121_v29 }
  0x27   :  { %148 = vmatpush.msra.mxu1 %v120_v30  ;;  %171 = vmatpush.msra.mxu2 %v120_v30 }
  0x28   :  { %91 = vmatpush.msra.mxu0 %v62_v26  ;;  %194 = vmatpush.msra.mxu3 %v120_v30 }
  0x29   :  { %149 = vmatpush.msra.mxu1 %v526_v31  ;;  %172 = vmatpush.msra.mxu2 %v526_v31 }
  0x2a   :  { %92 = vmatpush.msra.mxu0 %v61_v27  ;;  %195 = vmatpush.msra.mxu3 %v526_v31 }
  0x2b   :  { %93 = vmatmul.f32.vlgmr.msra.gmra.mxu0 %v53_v28  ;;  %150 = vmatpush.msra.mxu1 %v118_v33 }
  0x2c   :  { %273 = vmatpush.msrb.mxu0 %v451_v4  ;;  %173 = vmatpush.msra.mxu2 %v118_v33 }
  0x2d   :  { %196 = vmatpush.msra.mxu3 %v118_v33  ;;  %204 = vmatpush.msrb.mxu1 %v451_v4 }
  0x2e   :  { %274 = vmatpush.msrb.mxu0 %v454_v6  ;;  %227 = vmatpush.msrb.mxu2 %v451_v4 }
  0x2f   :  { %250 = vmatpush.msrb.mxu3 %v451_v4  ;;  %205 = vmatpush.msrb.mxu1 %v454_v6 }
  0x30   :  { %275 = vmatpush.msrb.mxu0 %v457_v7  ;;  %228 = vmatpush.msrb.mxu2 %v454_v6 }
  0x31   :  { %251 = vmatpush.msrb.mxu3 %v454_v6  ;;  %206 = vmatpush.msrb.mxu1 %v457_v7 }
  0x32   :  { %276 = vmatpush.msrb.mxu0 %v462_v9  ;;  %229 = vmatpush.msrb.mxu2 %v457_v7 }
  0x33   :  { %96 = vmatmul.f32.gmra.mxu0 %v54_v32  ;;  %252 = vmatpush.msrb.mxu3 %v457_v7 }
  0x34   :  { %277 = vmatpush.msrb.mxu0 %v467_v11  ;;  %207 = vmatpush.msrb.mxu1 %v462_v9 }
  0x35   :  { %230 = vmatpush.msrb.mxu2 %v462_v9  ;;  %253 = vmatpush.msrb.mxu3 %v462_v9 }
  0x36   :  { %278 = vmatpush.msrb.mxu0 %v472_v13  ;;  %208 = vmatpush.msrb.mxu1 %v467_v11 }
  0x37   :  { %231 = vmatpush.msrb.mxu2 %v467_v11  ;;  %254 = vmatpush.msrb.mxu3 %v467_v11 }
  0x38   :  { %279 = vmatpush.msrb.mxu0 %v477_v15  ;;  %209 = vmatpush.msrb.mxu1 %v472_v13 }
  0x39   :  { %232 = vmatpush.msrb.mxu2 %v472_v13  ;;  %255 = vmatpush.msrb.mxu3 %v472_v13  ;;  %v338_v13 = vld [vmem:[%s604_s3] ss:$0 sm:$0xff] }
  0x3a   :  { %280 = vmatpush.msrb.mxu0 %v482_v17  ;;  %210 = vmatpush.msrb.mxu1 %v477_v15 }
  0x3b   :  { %233 = vmatpush.msrb.mxu2 %v477_v15  ;;  %256 = vmatpush.msrb.mxu3 %v477_v15 }
  0x3c   :  { %281 = vmatpush.msrb.mxu0 %v487_v19  ;;  %211 = vmatpush.msrb.mxu1 %v482_v17 }
  0x3d   :  { %234 = vmatpush.msrb.mxu2 %v482_v17  ;;  %257 = vmatpush.msrb.mxu3 %v482_v17 }
  0x3e   :  { %282 = vmatpush.msrb.mxu0 %v492_v21  ;;  %212 = vmatpush.msrb.mxu1 %v487_v19 }
  0x3f   :  { %235 = vmatpush.msrb.mxu2 %v487_v19  ;;  %258 = vmatpush.msrb.mxu3 %v487_v19 }
  0x40   :  { %283 = vmatpush.msrb.mxu0 %v497_v23  ;;  %213 = vmatpush.msrb.mxu1 %v492_v21 }
  0x41   :  { %236 = vmatpush.msrb.mxu2 %v492_v21  ;;  %259 = vmatpush.msrb.mxu3 %v492_v21 }
  0x42   :  { %284 = vmatpush.msrb.mxu0 %v502_v25  ;;  %214 = vmatpush.msrb.mxu1 %v497_v23 }
  0x43   :  { %237 = vmatpush.msrb.mxu2 %v497_v23  ;;  %260 = vmatpush.msrb.mxu3 %v497_v23 }
  0x44   :  { %285 = vmatpush.msrb.mxu0 %v121_v29  ;;  %215 = vmatpush.msrb.mxu1 %v502_v25 }
  0x45   :  { %238 = vmatpush.msrb.mxu2 %v502_v25  ;;  %261 = vmatpush.msrb.mxu3 %v502_v25 }
  0x46   :  { %286 = vmatpush.msrb.mxu0 %v120_v30  ;;  %216 = vmatpush.msrb.mxu1 %v121_v29 }
  0x47   :  { %239 = vmatpush.msrb.mxu2 %v121_v29  ;;  %262 = vmatpush.msrb.mxu3 %v121_v29 }
  0x48   :  { %287 = vmatpush.msrb.mxu0 %v526_v31  ;;  %217 = vmatpush.msrb.mxu1 %v120_v30 }
  0x49   :  { %240 = vmatpush.msrb.mxu2 %v120_v30  ;;  %263 = vmatpush.msrb.mxu3 %v120_v30 }
  0x4a   :  { %288 = vmatpush.msrb.mxu0 %v118_v33  ;;  %218 = vmatpush.msrb.mxu1 %v526_v31 }
  0x4b   :  { %241 = vmatpush.msrb.mxu2 %v526_v31  ;;  %264 = vmatpush.msrb.mxu3 %v526_v31 }
  0x4c   :  { %219 = vmatpush.msrb.mxu1 %v118_v33  ;;  %99 = vmatmul.f32.gmra.mxu0 %v55_v36 }
  0x4d   :  { %242 = vmatpush.msrb.mxu2 %v118_v33  ;;  %265 = vmatpush.msrb.mxu3 %v118_v33 }
  0x54   :  { %102 = vmatmul.f32.gmra.mxu0 %v56_v41 }
  0x5c   :  { %105 = vmatmul.f32.gmra.mxu0 %v57_v48 }
  0x64   :  { %108 = vmatmul.f32.gmra.mxu0 %v58_v54 }
  0x6c   :  { %111 = vmatmul.f32.gmra.mxu0 %v59_v60 }
  0x74   :  { %114 = vmatmul.f32.gmra.mxu0 %v60_v2 }
  0xa8   :  { %v94_v34 = vpop.f32.mrf.mxu0 }
  0xa9   :  { %339 = vtanh.f32 %v94_v34 }
  0xaf   :  { %v340_v35 = vpop.eup %339 }
  0xb0   :  { %151 = vmatmul.f32.vlgmr.msra.gmra.mxu1 %v340_v35  ;;  %v97_v37 = vpop.f32.mrf.mxu0 }
  0xc9   :  { %v100_v42 = vpop.f32.mrf.mxu0 }
  0xd1   :  { %v103_v49 = vpop.f32.mrf.mxu0 }
  0xd9   :  { %v106_v55 = vpop.f32.mrf.mxu0 }
  0xe1   :  { %v109_v61 = vpop.f32.mrf.mxu0 }
  0xe9   :  { %v112_v3 = vpop.f32.mrf.mxu0 }
  0xf1   :  { %v115_v8 = vpop.f32.mrf.mxu0 }
 0x12d   :  { %v152_v38 = vpop.f32.mrf.mxu1 }
 0x12e   :  { %v155_v39 = vadd.f32 %v152_v38, %v97_v37 }
 0x130   :  { %341 = vtanh.f32 %v155_v39 }
 0x136   :  { %v342_v40 = vpop.eup %341 }
 0x137   :  { %174 = vmatmul.f32.vlgmr.msra.gmra.mxu2 %v342_v40  ;;  %v157_v45 = vadd.f32 %v342_v40, %v340_v35 }
 0x1ba   :  { %v175_v43 = vpop.f32.mrf.mxu2 }
 0x1bb   :  { %v178_v44 = vadd.f32 %v175_v43, %v100_v42 }
 0x1bd   :  { %343 = vtanh.f32 %v178_v44 }
 0x1c3   :  { %v344_v46 = vpop.eup %343 }
 0x1c4   :  { %v180_v47 = vadd.f32 %v344_v46, %v157_v45  ;;  %197 = vmatmul.f32.vlgmr.msra.gmra.mxu3 %v344_v46 }
 0x247   :  { %v198_v50 = vpop.f32.mrf.mxu3 }
 0x248   :  { %v201_v51 = vadd.f32 %v198_v50, %v103_v49 }
 0x24a   :  { %345 = vtanh.f32 %v201_v51 }
 0x250   :  { %v346_v52 = vpop.eup %345 }
 0x251   :  { %v203_v53 = vadd.f32 %v346_v52, %v180_v47  ;;  %220 = vmatmul.f32.vlgmr.msrb.gmra.mxu1 %v346_v52 }
 0x2ce   :  { %v221_v56 = vpop.f32.mrf.mxu1 }
 0x2cf   :  { %v224_v57 = vadd.f32 %v221_v56, %v106_v55 }
 0x2d1   :  { %347 = vtanh.f32 %v224_v57 }
 0x2d7   :  { %v348_v58 = vpop.eup %347 }
 0x2d8   :  { %v226_v59 = vadd.f32 %v348_v58, %v203_v53  ;;  %243 = vmatmul.f32.vlgmr.msrb.gmra.mxu2 %v348_v58 }
 0x35b   :  { %v244_v62 = vpop.f32.mrf.mxu2 }
 0x35c   :  { %v247_v63 = vadd.f32 %v244_v62, %v109_v61 }
 0x35e   :  { %349 = vtanh.f32 %v247_v63 }
 0x364   :  { %v350_v0 = vpop.eup %349 }
 0x365   :  { %266 = vmatmul.f32.vlgmr.msrb.gmra.mxu3 %v350_v0  ;;  %v249_v1 = vadd.f32 %v350_v0, %v226_v59 }
 0x3e8   :  { %v267_v4 = vpop.f32.mrf.mxu3 }
 0x3e9   :  { %v270_v5 = vadd.f32 %v267_v4, %v112_v3 }
 0x3eb   :  { %351 = vtanh.f32 %v270_v5 }
 0x3f1   :  { %v352_v6 = vpop.eup %351 }
 0x3f2   :  { %289 = vmatmul.f32.vlgmr.msrb.gmra.mxu0 %v352_v6  ;;  %v272_v7 = vadd.f32 %v352_v6, %v249_v1 }
 0x46f   :  { %v290_v9 = vpop.f32.mrf.mxu0 }
 0x470   :  { %v293_v10 = vadd.f32 %v290_v9, %v115_v8 }
 0x472   :  { %353 = vtanh.f32 %v293_v10 }
 0x478   :  { %v354_v11 = vpop.eup %353 }
 0x479   :  { %v295_v12 = vadd.f32 %v354_v11, %v272_v7 }
 0x47b   :  { %v296_v14 = vmul.f32 0.125, %v295_v12 }
 0x47d   :  { %v301_v15 = vmul.f32 %v338_v13, %v296_v14 }
 0x47f   :  { %302 = vadd.xlane.f32.xlu0 %v301_v15 }
 0x4f2   :  { %v303_v17 = vpop.xlane.xlu0 %302 }
 0x4f3   :  { %v306_v18 = vadd.f32 %v305_v16, %v303_v17 }
 0x4f5   :  { %v333_v19 = vmul.f32 -1.442695, %v306_v18 }
 0x4f7   :  { %355 = vpow2.f32 %v333_v19 }
 0x4fd   :  { %v356_v20 = vpop.eup %355 }
 0x4fe   :  { %v310_v21 = vadd.f32 1.0, %v356_v20 }
 0x500   :  { %357 = vrcp.f32 %v310_v21  ;;  %v322_v25 = vand.u32 2147483648, %v310_v21  ;;  %v320_v27 = vand.u32 2147483647, %v310_v21  ;;  %vm316_vm1 = vweird.f32 %v310_v21 }
 0x502   :  { %v323_v29 = vor.u32 1.1754944e-38, %v322_v25  ;;  %vm321_vm3 = vcmp.eq.f32.partialorder %v320_v27, 8.507059e+37 }
 0x506   :  { %v358_v22 = vpop.eup %357 }
 0x507   :  { %v312_v23 = vmul.f32 %v358_v22, %v310_v21  ;;  %vm317_vm0 = vweird.f32 %v358_v22 }
 0x508   :  { %vm318_vm2 = vmor %vm316_vm1, %vm317_vm0 }
 0x509   :  { %v313_v24 = vsub.f32 1.0, %v312_v23 }
 0x50b   :  { %v314_v26 = vmul.f32 %v358_v22, %v313_v24 }
 0x50d   :  { %v315_v28 = vadd.f32 %v358_v22, %v314_v26 }
 0x50f   :  { %v319_v30 = vsel %vm318_vm2, %v358_v22, %v315_v28 }
 0x510   :  { %v324_v31 = vsel %vm321_vm3, %v323_v29, %v319_v30 }
 0x511   :  { %326 = vst [vmem:[%s606_s5] sm:$0xff] %v324_v31 }
 0x512   :  { %331 = vsyncpa [#allocation4], 1 }
 0x513   :  { %332 = vsyncpa [#allocation6], 1 }

</bundles_post_ra>
